<compile_context>
chip_gen: v6e
topology: v6e:2x2x1
jax: 0.10.0
libtpu: 0.0.40
codegen_flags: <defaults>
</compile_context>

<pallas_src>
import functools

import jax
import jax.numpy as jnp
from jax.experimental import pallas as pl
from jax.experimental.pallas import tpu as pltpu


def _phase_decompose(x_nchw, *, kh, kw, sh, sw, ph, pw, Ho, Wo, compute_dtype):
    """NCHW -> (N, sh*sw, Hq, Wq, C) stride-phase planes of the zero-padded input.

    Plane p = py*sw + px holds padded_input[sh*q + py, sw*r + px, :] at (q, r), so
    the conv tap (dy, dx) at output (ho, wo) is
        plane(dy % sh, dx % sw)[ho + dy // sh, wo + dx // sw]
    i.e. an *unstrided* window slice, which is what the kernel loads.  Total size
    equals the padded input (no im2col duplication).
    """
    N, C, H, W = x_nchw.shape
    Hq = Ho + (kh - 1) // sh
    Wq = Wo + (kw - 1) // sw
    Hp, Wp = sh * Hq, sw * Wq          # covers every position the conv reads
    x = x_nchw.astype(compute_dtype)                       # cast early (HBM traffic)
    x = jnp.transpose(x, (0, 2, 3, 1))                     # NHWC (small copy)
    x = jnp.pad(x, ((0, 0),
                    (ph, max(0, Hp - H - ph)),
                    (pw, max(0, Wp - W - pw)),
                    (0, 0)))
    x = x[:, :Hp, :Wp, :]
    x = x.reshape(N, Hq, sh, Wq, sw, C)
    x = jnp.transpose(x, (0, 2, 4, 1, 3, 5))               # (N, sh, sw, Hq, Wq, C)
    return x.reshape(N, sh * sw, Hq, Wq, C), Hq, Wq


def _conv_bn_lrelu_kernel(x_ref, w_ref, b_ref, o_ref, *,
                          kh, kw, sh, sw, Ho, Wo, negative_slope):
    # x_ref: (1, sh*sw, Hq, Wq, C)  phase-decomposed, zero-padded input (one batch)
    # w_ref: (kh*kw, C, out_ch)     BN-scale-folded conv weights (f32, resident)
    # b_ref: (1, out_ch)            folded BN bias (f32, resident)
    # o_ref: (1, Ho*Wo, out_ch)
    acc = None
    for dy in range(kh):
        for dx in range(kw):
            py, qy = dy % sh, dy // sh
            px, qx = dx % sw, dx // sw
            # Unstrided window slice of the resident phase plane: (Ho, Wo, C).
            tap = x_ref[0, py * sw + px, pl.ds(qy, Ho), pl.ds(qx, Wo), :]
            tap = tap.astype(jnp.float32).reshape(Ho * Wo, tap.shape[-1])
            part = jnp.dot(tap, w_ref[dy * kw + dx],
                           preferred_element_type=jnp.float32)
            acc = part if acc is None else acc + part
    y = acc + b_ref[...]
    y = jnp.maximum(y, negative_slope * y)      # LeakyReLU (0 <= slope <= 1)
    o_ref[0] = y.astype(o_ref.dtype)


def down_forward(x, weight, gamma, beta, running_mean, running_var, *,
                 stride, padding, eps=1e-5, negative_slope=0.01,
                 compute_dtype=jnp.bfloat16):
    """Forward pass of `down` (Conv2d(no bias) -> BatchNorm2d(eval) -> LeakyReLU)."""
    N, C, H, W = x.shape
    out_ch, in_ch, kh, kw = weight.shape
    assert in_ch == C
    sh, sw = stride
    ph, pw = padding
    Ho = (H + 2 * ph - kh) // sh + 1
    Wo = (W + 2 * pw - kw) // sw + 1

    # --- glue: O(input)-sized layout passes only, no patch-matrix in HBM ---
    xph, Hq, Wq = _phase_decompose(x, kh=kh, kw=kw, sh=sh, sw=sw, ph=ph, pw=pw,
                                   Ho=Ho, Wo=Wo, compute_dtype=compute_dtype)

    # --- fold BatchNorm2d (inference) into per-tap weights + a channel bias ---
    scale = gamma / jnp.sqrt(running_var + eps)                       # (out_ch,)
    bias = (beta - running_mean * scale).reshape(1, out_ch).astype(jnp.float32)
    # OIHW -> (kh, kw, C, out_ch) -> (kh*kw, C, out_ch); tiny, keep f32.
    w_taps = jnp.transpose(weight, (2, 3, 1, 0)).reshape(kh * kw, C, out_ch)
    w_taps = (w_taps * scale[None, None, :]).astype(jnp.float32)

    kern = functools.partial(_conv_bn_lrelu_kernel, kh=kh, kw=kw, sh=sh, sw=sw,
                             Ho=Ho, Wo=Wo, negative_slope=negative_slope)
    flops = 2 * N * Ho * Wo * kh * kw * C * out_ch
    bytes_accessed = int(xph.size) * xph.dtype.itemsize \
        + int(w_taps.size) * 4 + int(bias.size) * 4 \
        + N * Ho * Wo * out_ch * x.dtype.itemsize

    out = pl.pallas_call(
        kern,
        out_shape=jax.ShapeDtypeStruct((N, Ho * Wo, out_ch), x.dtype),
        grid_spec=pltpu.PrefetchScalarGridSpec(
            num_scalar_prefetch=0,
            grid=(N,),                                    # >= 2 steps: v7x megacore
            in_specs=[
                # Whole per-batch phase image resident in VMEM (few KiB here).
                pl.BlockSpec((1, sh * sw, Hq, Wq, C), lambda n: (n, 0, 0, 0, 0)),
                pl.BlockSpec((kh * kw, C, out_ch), lambda n: (0, 0, 0)),
                pl.BlockSpec((1, out_ch), lambda n: (0, 0)),
            ],
            out_specs=pl.BlockSpec((1, Ho * Wo, out_ch), lambda n: (n, 0, 0)),
        ),
        compiler_params=pltpu.CompilerParams(
            dimension_semantics=("parallel",),
            vmem_limit_bytes=32 * 1024 * 1024),
        cost_estimate=pl.CostEstimate(flops=flops, transcendentals=0,
                                      bytes_accessed=bytes_accessed),
    )(xph, w_taps, bias)

    # Exact-size output: one fused reshape+transpose back to NCHW (nothing padded).
    return out.reshape(N, Ho, Wo, out_ch).transpose(0, 3, 1, 2)


def _reference_forward(x, weight, gamma, beta, running_mean, running_var,
                       *, stride, padding, eps=1e-5, negative_slope=0.01):
    ph, pw = padding
    y = jax.lax.conv_general_dilated(
        x, weight, window_strides=stride, padding=[(ph, ph), (pw, pw)],
        dimension_numbers=("NCHW", "OIHW", "NCHW"))
    scale = gamma / jnp.sqrt(running_var + eps)
    bias = beta - running_mean * scale
    y = y * scale[None, :, None, None] + bias[None, :, None, None]
    return jnp.where(y >= 0, y, negative_slope * y)


if __name__ == "__main__":
    # Module config: down(in_ch=4, out_ch=8, kernel_size=3, padding=1, square_kernel=True)
    N, in_ch, H, W = 2, 4, 16, 16
    out_ch, k, p = 8, 3, 1
    stride, padding = (2, 2), (p, p)

    key = jax.random.PRNGKey(0)
    kx, kw, kg, kb, km, kv = jax.random.split(key, 6)

    x = jax.random.normal(kx, (N, in_ch, H, W), dtype=jnp.float32)
    weight = jax.random.normal(kw, (out_ch, in_ch, k, k), dtype=jnp.float32) * 0.1
    gamma = 1.0 + 0.1 * jax.random.normal(kg, (out_ch,), dtype=jnp.float32)
    beta = 0.1 * jax.random.normal(kb, (out_ch,), dtype=jnp.float32)
    running_mean = 0.1 * jax.random.normal(km, (out_ch,), dtype=jnp.float32)
    running_var = jax.random.uniform(kv, (out_ch,), minval=0.5, maxval=1.5,
                                     dtype=jnp.float32)

    ref = _reference_forward(x, weight, gamma, beta, running_mean, running_var,
                             stride=stride, padding=padding)

    # f32 path: tight check against the XLA conv reference.
    out_f32 = down_forward(x, weight, gamma, beta, running_mean, running_var,
                           stride=stride, padding=padding,
                           compute_dtype=jnp.float32)
    out_f32 = jax.block_until_ready(out_f32)
    assert out_f32.shape == (N, out_ch, H // 2, W // 2), out_f32.shape
    assert jnp.allclose(out_f32, ref, atol=1e-4, rtol=1e-4), float(
        jnp.max(jnp.abs(out_f32 - ref)))

    # Default bf16-input path (HBM-traffic optimized): looser tolerance.
    out = down_forward(x, weight, gamma, beta, running_mean, running_var,
                       stride=stride, padding=padding)
    out = jax.block_until_ready(out)
    assert out.shape == (N, out_ch, H // 2, W // 2), out.shape
    assert jnp.allclose(out, ref, atol=3e-2, rtol=3e-2), float(
        jnp.max(jnp.abs(out - ref)))

    print("KERNEL_OK")
</pallas_src>

<mosaic_0001>
module attributes {stable_mosaic.version = 11 : i64} {
  func.func @_conv_bn_lrelu_kernel(%arg0: i32, %arg1: memref<1x4x9x9x4xf32, #tpu.memory_space<vmem>>, %arg2: memref<9x4x8xf32, #tpu.memory_space<vmem>>, %arg3: memref<1x8xf32, #tpu.memory_space<vmem>>, %arg4: memref<1x64x8xf32, #tpu.memory_space<vmem>>) attributes {dimension_semantics = [#tpu.dimension_semantics<parallel>], iteration_bounds = array<i64: 2>, scalar_prefetch = 0 : i64, scratch_operands = 0 : i64, tpu.core_type = #tpu.core_type<tc>, window_params = [{transform_indices = @transform_0, window_bounds = array<i64: 1, 4, 9, 9, 4>}, {pipeline_mode = #tpu.pipeline_mode<synchronous>, transform_indices = @transform_1, window_bounds = array<i64: 9, 4, 8>}, {pipeline_mode = #tpu.pipeline_mode<synchronous>, transform_indices = @transform_2, window_bounds = array<i64: 1, 8>}, {transform_indices = @transform_3, window_bounds = array<i64: 1, 64, 8>}]} {
    %c0 = arith.constant 0 : index
    %c0_0 = arith.constant 0 : index
    %c0_1 = arith.constant 0 : index
    %c0_2 = arith.constant 0 : index
    %c0_3 = arith.constant 0 : index
    %0 = vector.load %arg1[%c0, %c0_0, %c0_1, %c0_2, %c0_3] : memref<1x4x9x9x4xf32, #tpu.memory_space<vmem>>, vector<1x1x8x8x4xf32>
    %1 = vector.shape_cast %0 : vector<1x1x8x8x4xf32> to vector<8x8x4xf32>
    %2 = vector.shape_cast %1 : vector<8x8x4xf32> to vector<64x4xf32>
    %c0_4 = arith.constant 0 : index
    %c0_5 = arith.constant 0 : index
    %c0_6 = arith.constant 0 : index
    %3 = vector.load %arg2[%c0_4, %c0_5, %c0_6] : memref<9x4x8xf32, #tpu.memory_space<vmem>>, vector<1x4x8xf32>
    %4 = vector.shape_cast %3 : vector<1x4x8xf32> to vector<4x8xf32>
    %cst = arith.constant dense<0.000000e+00> : vector<64x8xf32>
    %5 = tpu.matmul %2, %4, %cst {dimension_numbers = #tpu.dot_dimension_numbers<[1], [0], [0], [1], [0, 0, 1, 1], [], []>} : vector<64x4xf32>, vector<4x8xf32>, vector<64x8xf32> -> vector<64x8xf32>
    %c0_7 = arith.constant 0 : index
    %c1 = arith.constant 1 : index
    %c0_8 = arith.constant 0 : index
    %c0_9 = arith.constant 0 : index
    %c0_10 = arith.constant 0 : index
    %6 = vector.load %arg1[%c0_7, %c1, %c0_8, %c0_9, %c0_10] : memref<1x4x9x9x4xf32, #tpu.memory_space<vmem>>, vector<1x1x8x8x4xf32>
    %7 = vector.shape_cast %6 : vector<1x1x8x8x4xf32> to vector<8x8x4xf32>
    %8 = vector.shape_cast %7 : vector<8x8x4xf32> to vector<64x4xf32>
    %c1_11 = arith.constant 1 : index
    %c0_12 = arith.constant 0 : index
    %c0_13 = arith.constant 0 : index
    %9 = vector.load %arg2[%c1_11, %c0_12, %c0_13] : memref<9x4x8xf32, #tpu.memory_space<vmem>>, vector<1x4x8xf32>
    %10 = vector.shape_cast %9 : vector<1x4x8xf32> to vector<4x8xf32>
    %cst_14 = arith.constant dense<0.000000e+00> : vector<64x8xf32>
    %11 = tpu.matmul %8, %10, %cst_14 {dimension_numbers = #tpu.dot_dimension_numbers<[1], [0], [0], [1], [0, 0, 1, 1], [], []>} : vector<64x4xf32>, vector<4x8xf32>, vector<64x8xf32> -> vector<64x8xf32>
    %12 = arith.addf %5, %11 : vector<64x8xf32>
    %c0_15 = arith.constant 0 : index
    %c0_16 = arith.constant 0 : index
    %c0_17 = arith.constant 0 : index
    %c1_18 = arith.constant 1 : index
    %c0_19 = arith.constant 0 : index
    %13 = vector.load %arg1[%c0_15, %c0_16, %c0_17, %c1_18, %c0_19] : memref<1x4x9x9x4xf32, #tpu.memory_space<vmem>>, vector<1x1x8x8x4xf32>
    %14 = vector.shape_cast %13 : vector<1x1x8x8x4xf32> to vector<8x8x4xf32>
    %15 = vector.shape_cast %14 : vector<8x8x4xf32> to vector<64x4xf32>
    %c2 = arith.constant 2 : index
    %c0_20 = arith.constant 0 : index
    %c0_21 = arith.constant 0 : index
    %16 = vector.load %arg2[%c2, %c0_20, %c0_21] : memref<9x4x8xf32, #tpu.memory_space<vmem>>, vector<1x4x8xf32>
    %17 = vector.shape_cast %16 : vector<1x4x8xf32> to vector<4x8xf32>
    %cst_22 = arith.constant dense<0.000000e+00> : vector<64x8xf32>
    %18 = tpu.matmul %15, %17, %cst_22 {dimension_numbers = #tpu.dot_dimension_numbers<[1], [0], [0], [1], [0, 0, 1, 1], [], []>} : vector<64x4xf32>, vector<4x8xf32>, vector<64x8xf32> -> vector<64x8xf32>
    %19 = arith.addf %12, %18 : vector<64x8xf32>
    %c0_23 = arith.constant 0 : index
    %c2_24 = arith.constant 2 : index
    %c0_25 = arith.constant 0 : index
    %c0_26 = arith.constant 0 : index
    %c0_27 = arith.constant 0 : index
    %20 = vector.load %arg1[%c0_23, %c2_24, %c0_25, %c0_26, %c0_27] : memref<1x4x9x9x4xf32, #tpu.memory_space<vmem>>, vector<1x1x8x8x4xf32>
    %21 = vector.shape_cast %20 : vector<1x1x8x8x4xf32> to vector<8x8x4xf32>
    %22 = vector.shape_cast %21 : vector<8x8x4xf32> to vector<64x4xf32>
    %c3 = arith.constant 3 : index
    %c0_28 = arith.constant 0 : index
    %c0_29 = arith.constant 0 : index
    %23 = vector.load %arg2[%c3, %c0_28, %c0_29] : memref<9x4x8xf32, #tpu.memory_space<vmem>>, vector<1x4x8xf32>
    %24 = vector.shape_cast %23 : vector<1x4x8xf32> to vector<4x8xf32>
    %cst_30 = arith.constant dense<0.000000e+00> : vector<64x8xf32>
    %25 = tpu.matmul %22, %24, %cst_30 {dimension_numbers = #tpu.dot_dimension_numbers<[1], [0], [0], [1], [0, 0, 1, 1], [], []>} : vector<64x4xf32>, vector<4x8xf32>, vector<64x8xf32> -> vector<64x8xf32>
    %26 = arith.addf %19, %25 : vector<64x8xf32>
    %c0_31 = arith.constant 0 : index
    %c3_32 = arith.constant 3 : index
    %c0_33 = arith.constant 0 : index
    %c0_34 = arith.constant 0 : index
    %c0_35 = arith.constant 0 : index
    %27 = vector.load %arg1[%c0_31, %c3_32, %c0_33, %c0_34, %c0_35] : memref<1x4x9x9x4xf32, #tpu.memory_space<vmem>>, vector<1x1x8x8x4xf32>
    %28 = vector.shape_cast %27 : vector<1x1x8x8x4xf32> to vector<8x8x4xf32>
    %29 = vector.shape_cast %28 : vector<8x8x4xf32> to vector<64x4xf32>
    %c4 = arith.constant 4 : index
    %c0_36 = arith.constant 0 : index
    %c0_37 = arith.constant 0 : index
    %30 = vector.load %arg2[%c4, %c0_36, %c0_37] : memref<9x4x8xf32, #tpu.memory_space<vmem>>, vector<1x4x8xf32>
    %31 = vector.shape_cast %30 : vector<1x4x8xf32> to vector<4x8xf32>
    %cst_38 = arith.constant dense<0.000000e+00> : vector<64x8xf32>
    %32 = tpu.matmul %29, %31, %cst_38 {dimension_numbers = #tpu.dot_dimension_numbers<[1], [0], [0], [1], [0, 0, 1, 1], [], []>} : vector<64x4xf32>, vector<4x8xf32>, vector<64x8xf32> -> vector<64x8xf32>
    %33 = arith.addf %26, %32 : vector<64x8xf32>
    %c0_39 = arith.constant 0 : index
    %c2_40 = arith.constant 2 : index
    %c0_41 = arith.constant 0 : index
    %c1_42 = arith.constant 1 : index
    %c0_43 = arith.constant 0 : index
    %34 = vector.load %arg1[%c0_39, %c2_40, %c0_41, %c1_42, %c0_43] : memref<1x4x9x9x4xf32, #tpu.memory_space<vmem>>, vector<1x1x8x8x4xf32>
    %35 = vector.shape_cast %34 : vector<1x1x8x8x4xf32> to vector<8x8x4xf32>
    %36 = vector.shape_cast %35 : vector<8x8x4xf32> to vector<64x4xf32>
    %c5 = arith.constant 5 : index
    %c0_44 = arith.constant 0 : index
    %c0_45 = arith.constant 0 : index
    %37 = vector.load %arg2[%c5, %c0_44, %c0_45] : memref<9x4x8xf32, #tpu.memory_space<vmem>>, vector<1x4x8xf32>
    %38 = vector.shape_cast %37 : vector<1x4x8xf32> to vector<4x8xf32>
    %cst_46 = arith.constant dense<0.000000e+00> : vector<64x8xf32>
    %39 = tpu.matmul %36, %38, %cst_46 {dimension_numbers = #tpu.dot_dimension_numbers<[1], [0], [0], [1], [0, 0, 1, 1], [], []>} : vector<64x4xf32>, vector<4x8xf32>, vector<64x8xf32> -> vector<64x8xf32>
    %40 = arith.addf %33, %39 : vector<64x8xf32>
    %c0_47 = arith.constant 0 : index
    %c0_48 = arith.constant 0 : index
    %c1_49 = arith.constant 1 : index
    %c0_50 = arith.constant 0 : index
    %c0_51 = arith.constant 0 : index
    %41 = vector.load %arg1[%c0_47, %c0_48, %c1_49, %c0_50, %c0_51] : memref<1x4x9x9x4xf32, #tpu.memory_space<vmem>>, vector<1x1x8x8x4xf32>
    %42 = vector.shape_cast %41 : vector<1x1x8x8x4xf32> to vector<8x8x4xf32>
    %43 = vector.shape_cast %42 : vector<8x8x4xf32> to vector<64x4xf32>
    %c6 = arith.constant 6 : index
    %c0_52 = arith.constant 0 : index
    %c0_53 = arith.constant 0 : index
    %44 = vector.load %arg2[%c6, %c0_52, %c0_53] : memref<9x4x8xf32, #tpu.memory_space<vmem>>, vector<1x4x8xf32>
    %45 = vector.shape_cast %44 : vector<1x4x8xf32> to vector<4x8xf32>
    %cst_54 = arith.constant dense<0.000000e+00> : vector<64x8xf32>
    %46 = tpu.matmul %43, %45, %cst_54 {dimension_numbers = #tpu.dot_dimension_numbers<[1], [0], [0], [1], [0, 0, 1, 1], [], []>} : vector<64x4xf32>, vector<4x8xf32>, vector<64x8xf32> -> vector<64x8xf32>
    %47 = arith.addf %40, %46 : vector<64x8xf32>
    %c0_55 = arith.constant 0 : index
    %c1_56 = arith.constant 1 : index
    %c1_57 = arith.constant 1 : index
    %c0_58 = arith.constant 0 : index
    %c0_59 = arith.constant 0 : index
    %48 = vector.load %arg1[%c0_55, %c1_56, %c1_57, %c0_58, %c0_59] : memref<1x4x9x9x4xf32, #tpu.memory_space<vmem>>, vector<1x1x8x8x4xf32>
    %49 = vector.shape_cast %48 : vector<1x1x8x8x4xf32> to vector<8x8x4xf32>
    %50 = vector.shape_cast %49 : vector<8x8x4xf32> to vector<64x4xf32>
    %c7 = arith.constant 7 : index
    %c0_60 = arith.constant 0 : index
    %c0_61 = arith.constant 0 : index
    %51 = vector.load %arg2[%c7, %c0_60, %c0_61] : memref<9x4x8xf32, #tpu.memory_space<vmem>>, vector<1x4x8xf32>
    %52 = vector.shape_cast %51 : vector<1x4x8xf32> to vector<4x8xf32>
    %cst_62 = arith.constant dense<0.000000e+00> : vector<64x8xf32>
    %53 = tpu.matmul %50, %52, %cst_62 {dimension_numbers = #tpu.dot_dimension_numbers<[1], [0], [0], [1], [0, 0, 1, 1], [], []>} : vector<64x4xf32>, vector<4x8xf32>, vector<64x8xf32> -> vector<64x8xf32>
    %54 = arith.addf %47, %53 : vector<64x8xf32>
    %c0_63 = arith.constant 0 : index
    %c0_64 = arith.constant 0 : index
    %c1_65 = arith.constant 1 : index
    %c1_66 = arith.constant 1 : index
    %c0_67 = arith.constant 0 : index
    %55 = vector.load %arg1[%c0_63, %c0_64, %c1_65, %c1_66, %c0_67] : memref<1x4x9x9x4xf32, #tpu.memory_space<vmem>>, vector<1x1x8x8x4xf32>
    %56 = vector.shape_cast %55 : vector<1x1x8x8x4xf32> to vector<8x8x4xf32>
    %57 = vector.shape_cast %56 : vector<8x8x4xf32> to vector<64x4xf32>
    %c8 = arith.constant 8 : index
    %c0_68 = arith.constant 0 : index
    %c0_69 = arith.constant 0 : index
    %58 = vector.load %arg2[%c8, %c0_68, %c0_69] : memref<9x4x8xf32, #tpu.memory_space<vmem>>, vector<1x4x8xf32>
    %59 = vector.shape_cast %58 : vector<1x4x8xf32> to vector<4x8xf32>
    %cst_70 = arith.constant dense<0.000000e+00> : vector<64x8xf32>
    %60 = tpu.matmul %57, %59, %cst_70 {dimension_numbers = #tpu.dot_dimension_numbers<[1], [0], [0], [1], [0, 0, 1, 1], [], []>} : vector<64x4xf32>, vector<4x8xf32>, vector<64x8xf32> -> vector<64x8xf32>
    %61 = arith.addf %54, %60 : vector<64x8xf32>
    %c0_71 = arith.constant 0 : index
    %c0_72 = arith.constant 0 : index
    %62 = vector.load %arg3[%c0_71, %c0_72] : memref<1x8xf32, #tpu.memory_space<vmem>>, vector<1x8xf32>
    %63 = vector.broadcast %62 : vector<1x8xf32> to vector<64x8xf32>
    %64 = arith.addf %61, %63 : vector<64x8xf32>
    %cst_73 = arith.constant 0.00999999977 : f32
    %65 = vector.broadcast %cst_73 : f32 to vector<64x8xf32>
    %66 = arith.mulf %65, %64 : vector<64x8xf32>
    %67 = arith.maximumf %64, %66 : vector<64x8xf32>
    %c0_74 = arith.constant 0 : index
    %c0_75 = arith.constant 0 : index
    %c0_76 = arith.constant 0 : index
    %68 = vector.load %arg4[%c0_74, %c0_75, %c0_76] : memref<1x64x8xf32, #tpu.memory_space<vmem>>, vector<1x64x8xf32>
    %69 = vector.shape_cast %68 : vector<1x64x8xf32> to vector<64x8xf32>
    %70 = vector.shape_cast %67 : vector<64x8xf32> to vector<1x64x8xf32>
    tpu.vector_store %arg4[%c0_74, %c0_75, %c0_76], %70 {strides = array<i32>} : memref<1x64x8xf32, #tpu.memory_space<vmem>>, vector<1x64x8xf32>,
    return
  }
  func.func @transform_0(%arg0: i32) -> (i32, i32, i32, i32, i32) {
    %c0_i32 = arith.constant 0 : i32
    %c0_i32_0 = arith.constant 0 : i32
    %c0_i32_1 = arith.constant 0 : i32
    %c0_i32_2 = arith.constant 0 : i32
    %c0_i32_3 = arith.constant 0 : i32
    return %arg0, %c0_i32, %c0_i32_0, %c0_i32_1, %c0_i32_2 : i32, i32, i32, i32, i32
  }
  func.func @transform_1(%arg0: i32) -> (i32, i32, i32) {
    %c0_i32 = arith.constant 0 : i32
    %c0_i32_0 = arith.constant 0 : i32
    %c0_i32_1 = arith.constant 0 : i32
    %c0_i32_2 = arith.constant 0 : i32
    return %c0_i32, %c0_i32_0, %c0_i32_1 : i32, i32, i32
  }
  func.func @transform_2(%arg0: i32) -> (i32, i32) {
    %c0_i32 = arith.constant 0 : i32
    %c0_i32_0 = arith.constant 0 : i32
    %c0_i32_1 = arith.constant 0 : i32
    return %c0_i32, %c0_i32_0 : i32, i32
  }
  func.func @transform_3(%arg0: i32) -> (i32, i32, i32) {
    %c0_i32 = arith.constant 0 : i32
    %c0_i32_0 = arith.constant 0 : i32
    %c0_i32_1 = arith.constant 0 : i32
    return %arg0, %c0_i32, %c0_i32_0 : i32, i32, i32
  }
}

</mosaic_0001>

<bundles_post_ra>
// kernel: tpu_custom_call.1
= control target key start
LH: loop header
LB: loop body
LE: loop exit
PB: predicated region body
PF: predicated region fallthrough
CT: control target
= control target key end

     0   :  { %s2009_s12 = smov 0   ;;  %s2326_s0 = inlined_call_operand.vmem [shape: f32[2,4,9,9,4], index: 0, kind: input, shape index: {}]   ;;  %s2327_s1 = inlined_call_operand.vmem [shape: f32[9,4,8], index: 1, kind: input, shape index: {}]   ;;  %s2328_s2 = inlined_call_operand.vmem [shape: f32[1,8], index: 2, kind: input, shape index: {}]   ;;  %s2329_s3 = inlined_call_operand.vmem [shape: f32[2,64,8], index: 3, kind: output, shape index: {}]  }
   0x1 LB: > { %s1606_s13 = sadd.s32 4294967295, %s1987_s12   ;;  %p1610_p0 = scmp.ge.s32.totalorder %s1987_s12, 1  ;;  %s1987_s12 = sphi %s2009_s12, %s13_s12  }
   0x2   : > { %p137_p1 = scmp.lt.s32.totalorder %s1987_s12, 3 }
   0x4   : > { %p138_p2 = pnand %p1610_p0, %p137_p1 }
   0x5   : > { %p161_p3 = scmp.lt.s32.totalorder (!%p138_p2), %s1606_s13, 1 }
   0x6   : > { %141 = sbr.rel (%p138_p2) target bundleno = 292 (0x124), region = 32 }
   0xb   : > { %v1622_v0 = vld [vmem:[%s2327_s1 + $0x4] sm:$0xf]  ;;  %vm216_vm0 = vcmask 1043456   ;;  %v179_v1 = vld [vmem:[%s2327_s1] sm:$0xf]  ;;  %s2331_s13 = smov (!%p161_p3, %s1606_s13), 1 }
   0xc   : > { %1970 = vmatprep.subr.msk.mxu1 %vm216_vm0, %v1622_v0  ;;  %1844 = vmatprep.subr.msk.mxu0 %vm216_vm0, %v1622_v0  ;;  %v1641_v2 = vld [vmem:[%s2327_s1 + $0x8] sm:$0xf]  ;;  %s1972_s20 = smul.u32 576, %s2331_s13  ;;  %vm191_vm1 = vcmask 31744   ;;  %v1659_v9 = vld [vmem:[%s2327_s1 + $0xc] sm:$0xf] }
   0xd   : > { %1971 = vmatpush3.msk.msra.mxu1 %vm216_vm0, %v1622_v0  ;;  %1845 = vmatpush3.msk.msra.mxu0 %vm216_vm0, %v1622_v0  ;;  %v1677_v10 = vld [vmem:[%s2327_s1 + $0x10] sm:$0xf]  ;;  %v1695_v19 = vld [vmem:[%s2327_s1 + $0x14] sm:$0xf]  ;;  %v1713_v20 = vld [vmem:[%s2327_s1 + $0x18] sm:$0xf] }
   0xe   : > { %1858 = vmatprep.subr.msk.mxu1 %vm216_vm0, %v179_v1  ;;  %1872 = vmatprep.subr.msk.mxu0 %vm216_vm0, %v1641_v2  ;;  %s2038_s23 = scalar_lea.vmem %s2326_s0, %s1972_s20  ;;  %v1731_v37 = vld [vmem:[%s2327_s1 + $0x1c] sm:$0xf]  ;;  %v1749_v38 = vld [vmem:[%s2327_s1 + $0x20] sm:$0xf]  ;;  %s1762_s11 = sshll.u32 %s2331_s13, 6  ;;  %vm1542_vm2 = vcmask 64512  }
   0xf   : > { %v1614_v3 = vld [vmem:[%s2038_s23 + $0x90] sm:$0xff]  ;;  %v2045_v5 = vld [vmem:[%s2038_s23 + $0xa0] sm:$0xff]  ;;  %s2299_s13 = scalar_lea.vmem %s2329_s3, %s1762_s11 }
  0x10   : > { %v2042_v4 = vld [vmem:[%s2038_s23 + $0xd0] sm:$0xff]  ;;  %1846 = vmatprep.mubr.msk.f32.mxu0 %vm191_vm1, %v1614_v3  ;;  %v2051_v6 = vld [vmem:[%s2038_s23 + $0xe0] sm:$0xff] }
  0x11   : > { %1852 = vmatprep.mubr.msk.f32.mxu1 %vm191_vm1, %v2042_v4  ;;  %v2054_v7 = vld [vmem:[%s2038_s23 + $0xb0] sm:$0xff]  ;;  %1847 = vmatmul.mubr.msk.f32.vlgmr.msra.gmra.mxu0 %vm191_vm1, %v2045_v5  ;;  %v2072_v11 = vld [vmem:[%s2038_s23 + $0xc0] sm:$0xff] }
  0x12   : > { %v2057_v8 = vld [vmem:[%s2038_s23 + $0xf0] sm:$0xff]  ;;  %1853 = vmatmul.mubr.msk.f32.vlgmr.msra.gmra.mxu1 %vm191_vm1, %v2051_v6  ;;  %1873 = vmatpush3.msk.msra.mxu0 %vm216_vm0, %v1641_v2  ;;  %v2075_v12 = vld [vmem:[%s2038_s23 + $0x100] sm:$0xff] }
  0x13   : > { %1859 = vmatpush3.msk.msra.mxu1 %vm216_vm0, %v179_v1  ;;  %1849 = vmatprep.mubr.msk.f32.mxu0 %vm191_vm1, %v2054_v7  ;;  %v171_v13 = vld [vmem:[%s2038_s23] sm:$0xff]  ;;  %v2092_v15 = vld [vmem:[%s2038_s23 + $0x10] sm:$0xff] }
  0x14   : > { %1855 = vmatprep.mubr.msk.f32.mxu1 %vm191_vm1, %v2057_v8  ;;  %v457_v14 = vld [vmem:[%s2038_s23 + $0x1] sm:$0xff]  ;;  %1886 = vmatprep.subr.msk.mxu1 %vm216_vm0, %v1659_v9  ;;  %v2095_v16 = vld [vmem:[%s2038_s23 + $0x11] sm:$0xff] }
  0x15   : > { %1900 = vmatprep.subr.msk.mxu0 %vm216_vm0, %v1677_v10  ;;  %1850 = vmatmul.mubr.msk.f32.gmra.mxu0 %vm191_vm1, %v2072_v11  ;;  %v2098_v17 = vld [vmem:[%s2038_s23 + $0x20] sm:$0xff]  ;;  %v2116_v21 = vld [vmem:[%s2038_s23 + $0x30] sm:$0xff] }
  0x16   : > { %1856 = vmatmul.mubr.msk.f32.gmra.mxu1 %vm191_vm1, %v2075_v12  ;;  %1874 = vmatprep.mubr.msk.f32.mxu0 %vm191_vm1, %v457_v14  ;;  %v2101_v18 = vld [vmem:[%s2038_s23 + $0x21] sm:$0xff]  ;;  %v2119_v22 = vld [vmem:[%s2038_s23 + $0x31] sm:$0xff] }
  0x17   : > { %1860 = vmatprep.mubr.msk.f32.mxu1 %vm191_vm1, %v171_v13  ;;  %v2126_v23 = vld [vmem:[%s2038_s23 + $0x40] sm:$0xff]  ;;  %v2142_v25 = vld [vmem:[%s2038_s23 + $0x50] sm:$0xff] }
  0x18   : > { %v2129_v24 = vld [vmem:[%s2038_s23 + $0x41] sm:$0xff]  ;;  %v2145_v26 = vld [vmem:[%s2038_s23 + $0x51] sm:$0xff] }
  0x19   : > { %1875 = vmatmul.mubr.msk.f32.vlgmr.msra.gmra.mxu0 %vm191_vm1, %v2095_v16  ;;  %v2148_v27 = vld [vmem:[%s2038_s23 + $0x60] sm:$0xff]  ;;  %v2162_v29 = vld [vmem:[%s2038_s23 + $0x70] sm:$0xff] }
  0x1a   : > { %1861 = vmatmul.mubr.msk.f32.vlgmr.msra.gmra.mxu1 %vm191_vm1, %v2092_v15  ;;  %1901 = vmatpush3.msk.msra.mxu0 %vm216_vm0, %v1677_v10  ;;  %v2151_v28 = vld [vmem:[%s2038_s23 + $0x61] sm:$0xff]  ;;  %v2165_v30 = vld [vmem:[%s2038_s23 + $0x71] sm:$0xff] }
  0x1b   : > { %1887 = vmatpush3.msk.msra.mxu1 %vm216_vm0, %v1659_v9  ;;  %1863 = vmatprep.mubr.msk.f32.mxu1 %vm191_vm1, %v2098_v17  ;;  %v1651_v31 = vld [vmem:[%s2038_s23 + $0x120] sm:$0xff]  ;;  %v1669_v32 = vld [vmem:[%s2038_s23 + $0x1b0] sm:$0xff] }
  0x1c   : > { %1877 = vmatprep.mubr.msk.f32.mxu0 %vm191_vm1, %v2101_v18  ;;  %1914 = vmatprep.subr.msk.mxu1 %vm216_vm0, %v1695_v19  ;;  %v1652_v33 = vld [vmem:[%s2038_s23 + $0x130] sm:$0xff]  ;;  %v1670_v34 = vld [vmem:[%s2038_s23 + $0x1c0] sm:$0xff] }
  0x1d   : > { %1928 = vmatprep.subr.msk.mxu0 %vm216_vm0, %v1713_v20  ;;  %1878 = vmatmul.mubr.msk.f32.gmra.mxu0 %vm191_vm1, %v2119_v22  ;;  %v1653_v35 = vld [vmem:[%s2038_s23 + $0x140] sm:$0xff]  ;;  %v1671_v36 = vld [vmem:[%s2038_s23 + $0x1d0] sm:$0xff] }
  0x1e   : > { %1864 = vmatmul.mubr.msk.f32.gmra.mxu1 %vm191_vm1, %v2116_v21  ;;  %1880 = vmatprep.mubr.msk.f32.mxu0 %vm191_vm1, %v2129_v24  ;;  %v1654_v39 = vld [vmem:[%s2038_s23 + $0x150] sm:$0xff]  ;;  %v1672_v40 = vld [vmem:[%s2038_s23 + $0x1e0] sm:$0xff] }
  0x1f   : > { %1866 = vmatprep.mubr.msk.f32.mxu1 %vm191_vm1, %v2126_v23  ;;  %v1655_v41 = vld [vmem:[%s2038_s23 + $0x160] sm:$0xff]  ;;  %v1673_v42 = vld [vmem:[%s2038_s23 + $0x1f0] sm:$0xff] }
  0x20   : > { %v1656_v43 = vld [vmem:[%s2038_s23 + $0x170] sm:$0xff]  ;;  %v1674_v44 = vld [vmem:[%s2038_s23 + $0x200] sm:$0xff] }
  0x21   : > { %1881 = vmatmul.mubr.msk.f32.gmra.mxu0 %vm191_vm1, %v2145_v26  ;;  %v1657_v45 = vld [vmem:[%s2038_s23 + $0x180] sm:$0xff]  ;;  %v1675_v46 = vld [vmem:[%s2038_s23 + $0x210] sm:$0xff] }
  0x22   : > { %1867 = vmatmul.mubr.msk.f32.gmra.mxu1 %vm191_vm1, %v2142_v25  ;;  %1883 = vmatprep.mubr.msk.f32.mxu0 %vm191_vm1, %v2151_v28  ;;  %v1658_v47 = vld [vmem:[%s2038_s23 + $0x190] sm:$0xff]  ;;  %v1676_v48 = vld [vmem:[%s2038_s23 + $0x220] sm:$0xff] }
  0x23   : > { %1869 = vmatprep.mubr.msk.f32.mxu1 %vm191_vm1, %v2148_v27  ;;  %v1687_v49 = vld [vmem:[%s2038_s23 + $0x121] sm:$0xff]  ;;  %v1688_v50 = vld [vmem:[%s2038_s23 + $0x131] sm:$0xff] }
  0x24   : > { %v1689_v51 = vld [vmem:[%s2038_s23 + $0x141] sm:$0xff]  ;;  %v1690_v52 = vld [vmem:[%s2038_s23 + $0x151] sm:$0xff] }
  0x25   : > { %1884 = vmatmul.mubr.msk.f32.gmra.mxu0 %vm191_vm1, %v2165_v30  ;;  %v1691_v53 = vld [vmem:[%s2038_s23 + $0x161] sm:$0xff]  ;;  %v1692_v54 = vld [vmem:[%s2038_s23 + $0x171] sm:$0xff] }
  0x26   : > { %1870 = vmatmul.mubr.msk.f32.gmra.mxu1 %vm191_vm1, %v2162_v29  ;;  %1902 = vmatprep.mubr.msk.f32.mxu0 %vm191_vm1, %v1669_v32  ;;  %v1693_v55 = vld [vmem:[%s2038_s23 + $0x181] sm:$0xff]  ;;  %v1694_v56 = vld [vmem:[%s2038_s23 + $0x191] sm:$0xff] }
  0x27   : > { %1888 = vmatprep.mubr.msk.f32.mxu1 %vm191_vm1, %v1651_v31  ;;  %v1712_v57 = vld [vmem:[%s2038_s23 + $0x80] sm:$0xff]  ;;  %v1730_v58 = vld [vmem:[%s2038_s23 + $0x110] sm:$0xff] }
  0x28   : > { %v1748_v59 = vld [vmem:[%s2038_s23 + $0x81] sm:$0xff] }
  0x29   : > { %1903 = vmatmul.mubr.msk.f32.vlgmr.msra.gmra.mxu0 %vm191_vm1, %v1670_v34 }
  0x2a   : > { %1889 = vmatmul.mubr.msk.f32.vlgmr.msra.gmra.mxu1 %vm191_vm1, %v1652_v33  ;;  %1929 = vmatpush3.msk.msra.mxu0 %vm216_vm0, %v1713_v20 }
  0x2b   : > { %1915 = vmatpush3.msk.msra.mxu1 %vm216_vm0, %v1695_v19  ;;  %1891 = vmatprep.mubr.msk.f32.mxu1 %vm191_vm1, %v1653_v35 }
  0x2c   : > { %1905 = vmatprep.mubr.msk.f32.mxu0 %vm191_vm1, %v1671_v36  ;;  %1942 = vmatprep.subr.msk.mxu1 %vm216_vm0, %v1731_v37 }
  0x2d   : > { %1956 = vmatprep.subr.msk.mxu0 %vm216_vm0, %v1749_v38  ;;  %1906 = vmatmul.mubr.msk.f32.gmra.mxu0 %vm191_vm1, %v1672_v40 }
  0x2e   : > { %1892 = vmatmul.mubr.msk.f32.gmra.mxu1 %vm191_vm1, %v1654_v39  ;;  %1908 = vmatprep.mubr.msk.f32.mxu0 %vm191_vm1, %v1673_v42 }
  0x2f   : > { %1894 = vmatprep.mubr.msk.f32.mxu1 %vm191_vm1, %v1655_v41 }
  0x31   : > { %1909 = vmatmul.mubr.msk.f32.gmra.mxu0 %vm191_vm1, %v1674_v44 }
  0x32   : > { %1895 = vmatmul.mubr.msk.f32.gmra.mxu1 %vm191_vm1, %v1656_v43  ;;  %1911 = vmatprep.mubr.msk.f32.mxu0 %vm191_vm1, %v1675_v46 }
  0x33   : > { %1897 = vmatprep.mubr.msk.f32.mxu1 %vm191_vm1, %v1657_v45 }
  0x35   : > { %1912 = vmatmul.mubr.msk.f32.gmra.mxu0 %vm191_vm1, %v1676_v48 }
  0x36   : > { %1898 = vmatmul.mubr.msk.f32.gmra.mxu1 %vm191_vm1, %v1658_v47  ;;  %1930 = vmatprep.mubr.msk.f32.mxu0 %vm191_vm1, %v2092_v15 }
  0x37   : > { %1916 = vmatprep.mubr.msk.f32.mxu1 %vm191_vm1, %v1687_v49 }
  0x39   : > { %1931 = vmatmul.mubr.msk.f32.vlgmr.msra.gmra.mxu0 %vm191_vm1, %v2098_v17 }
  0x3a   : > { %1917 = vmatmul.mubr.msk.f32.vlgmr.msra.gmra.mxu1 %vm191_vm1, %v1688_v50  ;;  %1957 = vmatpush3.msk.msra.mxu0 %vm216_vm0, %v1749_v38 }
  0x3b   : > { %1943 = vmatpush3.msk.msra.mxu1 %vm216_vm0, %v1731_v37  ;;  %1919 = vmatprep.mubr.msk.f32.mxu1 %vm191_vm1, %v1689_v51 }
  0x3c   : > { %1933 = vmatprep.mubr.msk.f32.mxu0 %vm191_vm1, %v2116_v21 }
  0x3d   : > { %1934 = vmatmul.mubr.msk.f32.gmra.mxu0 %vm191_vm1, %v2126_v23 }
  0x3e   : > { %1920 = vmatmul.mubr.msk.f32.gmra.mxu1 %vm191_vm1, %v1690_v52  ;;  %1936 = vmatprep.mubr.msk.f32.mxu0 %vm191_vm1, %v2142_v25 }
  0x3f   : > { %1922 = vmatprep.mubr.msk.f32.mxu1 %vm191_vm1, %v1691_v53 }
  0x41   : > { %1937 = vmatmul.mubr.msk.f32.gmra.mxu0 %vm191_vm1, %v2148_v27 }
  0x42   : > { %1923 = vmatmul.mubr.msk.f32.gmra.mxu1 %vm191_vm1, %v1692_v54  ;;  %1939 = vmatprep.mubr.msk.f32.mxu0 %vm191_vm1, %v2162_v29 }
  0x43   : > { %1925 = vmatprep.mubr.msk.f32.mxu1 %vm191_vm1, %v1693_v55 }
  0x45   : > { %1940 = vmatmul.mubr.msk.f32.gmra.mxu0 %vm191_vm1, %v1712_v57 }
  0x46   : > { %1926 = vmatmul.mubr.msk.f32.gmra.mxu1 %vm191_vm1, %v1694_v56  ;;  %1958 = vmatprep.mubr.msk.f32.mxu0 %vm191_vm1, %v2095_v16 }
  0x47   : > { %1944 = vmatprep.mubr.msk.f32.mxu1 %vm191_vm1, %v2045_v5 }
  0x49   : > { %1959 = vmatmul.mubr.msk.f32.vlgmr.msra.gmra.mxu0 %vm191_vm1, %v2101_v18 }
  0x4a   : > { %1945 = vmatmul.mubr.msk.f32.vlgmr.msra.gmra.mxu1 %vm191_vm1, %v2054_v7  ;;  %1961 = vmatprep.mubr.msk.f32.mxu0 %vm191_vm1, %v2119_v22 }
  0x4b   : > { %1947 = vmatprep.mubr.msk.f32.mxu1 %vm191_vm1, %v2072_v11 }
  0x4d   : > { %1962 = vmatmul.mubr.msk.f32.gmra.mxu0 %vm191_vm1, %v2129_v24 }
  0x4e   : > { %1948 = vmatmul.mubr.msk.f32.gmra.mxu1 %vm191_vm1, %v2042_v4  ;;  %1964 = vmatprep.mubr.msk.f32.mxu0 %vm191_vm1, %v2145_v26 }
  0x4f   : > { %1950 = vmatprep.mubr.msk.f32.mxu1 %vm191_vm1, %v2051_v6 }
  0x51   : > { %1965 = vmatmul.mubr.msk.f32.gmra.mxu0 %vm191_vm1, %v2151_v28 }
  0x52   : > { %1951 = vmatmul.mubr.msk.f32.gmra.mxu1 %vm191_vm1, %v2057_v8  ;;  %1967 = vmatprep.mubr.msk.f32.mxu0 %vm191_vm1, %v2165_v30 }
  0x53   : > { %1953 = vmatprep.mubr.msk.f32.mxu1 %vm191_vm1, %v2075_v12 }
  0x55   : > { %1968 = vmatmul.mubr.msk.f32.gmra.mxu0 %vm191_vm1, %v1748_v59 }
  0x56   : > { %1954 = vmatmul.mubr.msk.f32.gmra.mxu1 %vm191_vm1, %v1730_v58 }
  0xd1   : > { %v1848_v60 = vpop.f32.mrf.mxu0 }
  0xd2   : > { %v1854_v61 = vpop.f32.mrf.mxu1 }
  0xd3   : > { %v286_v62 = vpop.f32.mrf.mxu0 }
  0xd4   : > { %v306_v63 = vpop.f32.mrf.mxu1 }
  0xd5   : > { %v1851_v0 = vpop.f32.mrf.mxu0 }
  0xd6   : > { %v1857_v1 = vpop.f32.mrf.mxu1 }
  0xd7   : > { %v296_v2 = vpop.f32.mrf.mxu0 }
  0xd8   : > { %v2279_v3 = vpop.f32.mrf.mxu1 }
  0xd9   : > { %v1876_v5 = vpop.f32.mrf.mxu0 }
  0xda   : > { %v1862_v4 = vpop.f32.mrf.mxu1 }
  0xdb   : > { %v560_v7 = vpop.f32.mrf.mxu0  ;;  %v424_v36 = vadd.f32 %v1862_v4, %v1848_v60 }
  0xdc   : > { %v418_v6 = vpop.f32.mrf.mxu1 }
  0xdd   : > { %v1879_v9 = vpop.f32.mrf.mxu0  ;;  %v419_v39 = vadd.f32 %v418_v6, %v286_v62  ;;  %v600_v42 = vadd.f32 %v1876_v5, %v424_v36 }
  0xde   : > { %v1865_v8 = vpop.f32.mrf.mxu1 }
  0xdf   : > { %v570_v11 = vpop.f32.mrf.mxu0  ;;  %v434_v43 = vadd.f32 %v1865_v8, %v1851_v0  ;;  %v599_v46 = vadd.f32 %v560_v7, %v419_v39 }
  0xe0   : > { %v428_v10 = vpop.f32.mrf.mxu1 }
  0xe1   : > { %v1882_v13 = vpop.f32.mrf.mxu0  ;;  %v429_v47 = vadd.f32 %v428_v10, %v296_v2  ;;  %v602_v51 = vadd.f32 %v1879_v9, %v434_v43 }
  0xe2   : > { %v1868_v12 = vpop.f32.mrf.mxu1 }
  0xe3   : > { %v580_v15 = vpop.f32.mrf.mxu0  ;;  %v444_v53 = vadd.f32 %v1868_v12, %v1854_v61  ;;  %v601_v57 = vadd.f32 %v570_v11, %v429_v47 }
  0xe4   : > { %v438_v14 = vpop.f32.mrf.mxu1 }
  0xe5   : > { %v1885_v17 = vpop.f32.mrf.mxu0  ;;  %v439_v54 = vadd.f32 %v438_v14, %v306_v63  ;;  %v604_v7 = vadd.f32 %v1882_v13, %v444_v53 }
  0xe6   : > { %v1871_v16 = vpop.f32.mrf.mxu1 }
  0xe7   : > { %v590_v19 = vpop.f32.mrf.mxu0  ;;  %v454_v60 = vadd.f32 %v1871_v16, %v1857_v1  ;;  %v603_v2 = vadd.f32 %v580_v15, %v439_v54 }
  0xe8   : > { %v448_v18 = vpop.f32.mrf.mxu1 }
  0xe9   : > { %v1904_v21 = vpop.f32.mrf.mxu0  ;;  %v449_v8 = vadd.f32 %v448_v18, %v2279_v3  ;;  %v606_v63 = vadd.f32 %v1885_v17, %v454_v60  ;;  %v2289_v17 = vld [vmem:[%s2328_s2] ss:$0 sm:$0xff] }
  0xea   : > { %v1890_v20 = vpop.f32.mrf.mxu1 }
  0xeb   : > { %v862_v23 = vpop.f32.mrf.mxu0  ;;  %v751_v48 = vadd.f32 %v1890_v20, %v600_v42 }
  0xec   : > { %v711_v22 = vpop.f32.mrf.mxu1 }
  0xed   : > { %v1907_v25 = vpop.f32.mrf.mxu0  ;;  %v750_v52 = vadd.f32 %v711_v22, %v599_v46  ;;  %v902_v58 = vadd.f32 %v1904_v21, %v751_v48 }
  0xee   : > { %v1893_v24 = vpop.f32.mrf.mxu1 }
  0xef   : > { %v872_v27 = vpop.f32.mrf.mxu0  ;;  %v753_v59 = vadd.f32 %v1893_v24, %v602_v51  ;;  %v901_v0 = vadd.f32 %v862_v23, %v750_v52  ;;  %v605_v24 = vadd.f32 %v590_v19, %v449_v8 }
  0xf0   : > { %v721_v26 = vpop.f32.mrf.mxu1 }
  0xf1   : > { %v1910_v29 = vpop.f32.mrf.mxu0  ;;  %v752_v5 = vadd.f32 %v721_v26, %v601_v57  ;;  %v904_v20 = vadd.f32 %v1907_v25, %v753_v59 }
  0xf2   : > { %v1896_v28 = vpop.f32.mrf.mxu1 }
  0xf3   : > { %v882_v31 = vpop.f32.mrf.mxu0  ;;  %v755_v12 = vadd.f32 %v1896_v28, %v604_v7  ;;  %v903_v22 = vadd.f32 %v872_v27, %v752_v5 }
  0xf4   : > { %v731_v30 = vpop.f32.mrf.mxu1 }
  0xf5   : > { %v2281_v33 = vpop.f32.mrf.mxu0  ;;  %v754_v14 = vadd.f32 %v731_v30, %v603_v2  ;;  %v906_v3 = vadd.f32 %v1910_v29, %v755_v12 }
  0xf6   : > { %v1899_v32 = vpop.f32.mrf.mxu1 }
  0xf7   : > { %v2283_v35 = vpop.f32.mrf.mxu0  ;;  %v757_v23 = vadd.f32 %v1899_v32, %v606_v63  ;;  %v905_v18 = vadd.f32 %v882_v31, %v754_v14 }
  0xf8   : > { %v741_v34 = vpop.f32.mrf.mxu1 }
  0xf9   : > { %v1932_v38 = vpop.f32.mrf.mxu0  ;;  %v756_v25 = vadd.f32 %v741_v34, %v605_v24  ;;  %v908_v32 = vadd.f32 %v2281_v33, %v757_v23 }
  0xfa   : > { %v1918_v37 = vpop.f32.mrf.mxu1 }
  0xfb   : > { %v1163_v41 = vpop.f32.mrf.mxu0  ;;  %v1052_v6 = vadd.f32 %v1918_v37, %v902_v58 }
  0xfc   : > { %v1012_v40 = vpop.f32.mrf.mxu1 }
  0xfd   : > { %v1935_v45 = vpop.f32.mrf.mxu0  ;;  %v1051_v61 = vadd.f32 %v1012_v40, %v901_v0  ;;  %v1203_v1 = vadd.f32 %v1932_v38, %v1052_v6 }
  0xfe   : > { %v1921_v44 = vpop.f32.mrf.mxu1 }
  0xff   : > { %v1173_v50 = vpop.f32.mrf.mxu0  ;;  %v1054_v16 = vadd.f32 %v1921_v44, %v904_v20  ;;  %v1202_v13 = vadd.f32 %v1163_v41, %v1051_v61  ;;  %v907_v44 = vadd.f32 %v2283_v35, %v756_v25 }
 0x100   : > { %v1022_v49 = vpop.f32.mrf.mxu1 }
 0x101   : > { %v1938_v56 = vpop.f32.mrf.mxu0  ;;  %v1053_v15 = vadd.f32 %v1022_v49, %v903_v22  ;;  %v1205_v30 = vadd.f32 %v1935_v45, %v1054_v16 }
 0x102   : > { %v1924_v55 = vpop.f32.mrf.mxu1 }
 0x103   : > { %v1183_v4 = vpop.f32.mrf.mxu0  ;;  %v1056_v39 = vadd.f32 %v1924_v55, %v906_v3  ;;  %v1204_v43 = vadd.f32 %v1173_v50, %v1053_v15 }
 0x104   : > { %v1032_v62 = vpop.f32.mrf.mxu1 }
 0x105   : > { %v1941_v9 = vpop.f32.mrf.mxu0  ;;  %v1055_v40 = vadd.f32 %v1032_v62, %v905_v18  ;;  %v1207_v52 = vadd.f32 %v1938_v56, %v1056_v39 }
 0x106   : > { %v1927_v10 = vpop.f32.mrf.mxu1 }
 0x107   : > { %v1193_v21 = vpop.f32.mrf.mxu0  ;;  %v1058_v46 = vadd.f32 %v1927_v10, %v908_v32  ;;  %v1206_v53 = vadd.f32 %v1183_v4, %v1055_v40 }
 0x108   : > { %v1042_v11 = vpop.f32.mrf.mxu1 }
 0x109   : > { %v1960_v36 = vpop.f32.mrf.mxu0  ;;  %v1057_v54 = vadd.f32 %v1042_v11, %v907_v44  ;;  %v1209_v60 = vadd.f32 %v1941_v9, %v1058_v46 }
 0x10a   : > { %v1946_v26 = vpop.f32.mrf.mxu1 }
 0x10b   : > { %v1354_v37 = vadd.f32 %v1946_v26, %v1203_v1  ;;  %v1464_v27 = vpop.f32.mrf.mxu0  ;;  %v1208_v2 = vadd.f32 %v1193_v21, %v1057_v54 }
 0x10c   : > { %v1314_v28 = vpop.f32.mrf.mxu1 }
 0x10d   : > { %v1504_v38 = vadd.f32 %v1960_v36, %v1354_v37  ;;  %v1353_v19 = vadd.f32 %v1314_v28, %v1202_v13  ;;  %v1963_v42 = vpop.f32.mrf.mxu0 }
 0x10e   : > { %v1949_v41 = vpop.f32.mrf.mxu1 }
 0x10f   : > { %v1519_v29 = vadd.f32 %v2289_v17, %v1504_v38  ;;  %v1503_v31 = vadd.f32 %v1464_v27, %v1353_v19  ;;  %v1356_v34 = vadd.f32 %v1949_v41, %v1205_v30  ;;  %v1474_v48 = vpop.f32.mrf.mxu0 }
 0x110   : > { %v1324_v47 = vpop.f32.mrf.mxu1 }
 0x111   : > { %v1527_v45 = vmul.f32 0.01, %v1519_v29  ;;  %v1518_v49 = vadd.f32 %v2289_v17, %v1503_v31  ;;  %v1506_v51 = vadd.f32 %v1963_v42, %v1356_v34  ;;  %v1355_v33 = vadd.f32 %v1324_v47, %v1204_v43  ;;  %v1966_v35 = vpop.f32.mrf.mxu0 }
 0x112   : > { %v1952_v50 = vpop.f32.mrf.mxu1 }
 0x113   : > { %v1535_v55 = vmax.f32 %v1519_v29, %v1527_v45  ;;  %v1526_v57 = vmul.f32 0.01, %v1518_v49  ;;  %v1521_v58 = vadd.f32 %v2289_v17, %v1506_v51  ;;  %v1505_v59 = vadd.f32 %v1474_v48, %v1355_v33  ;;  %v1484_v4 = vpop.f32.mrf.mxu0 }
 0x114   : > { %v1358_v62 = vadd.f32 %v1952_v50, %v1207_v52  ;;  %v1334_v56 = vpop.f32.mrf.mxu1 }
 0x115   : > { %1544 = vst.msk [vmem:[%s2299_s13 + $0x8] sm:$0xff] %vm1542_vm2, %v1535_v55  ;;  %v1534_v0 = vmax.f32 %v1518_v49, %v1526_v57  ;;  %v1529_v5 = vmul.f32 0.01, %v1521_v58  ;;  %v1520_v6 = vadd.f32 %v2289_v17, %v1505_v59  ;;  %v1357_v7 = vadd.f32 %v1334_v56, %v1206_v53  ;;  %v1969_v20 = vpop.f32.mrf.mxu0 }
 0x116   : > { %v1508_v8 = vadd.f32 %v1966_v35, %v1358_v62  ;;  %v1955_v10 = vpop.f32.mrf.mxu1 }
 0x117   : > { %1543 = vst.msk [vmem:[%s2299_s13] sm:$0xff] %vm1542_vm2, %v1534_v0  ;;  %v1537_v61 = vmax.f32 %v1521_v58, %v1529_v5  ;;  %v1528_v9 = vmul.f32 0.01, %v1520_v6  ;;  %v1507_v63 = vadd.f32 %v1484_v4, %v1357_v7  ;;  %v1360_v12 = vadd.f32 %v1955_v10, %v1209_v60  ;;  %v1494_v23 = vpop.f32.mrf.mxu0 }
 0x118   : > { %v1523_v14 = vadd.f32 %v2289_v17, %v1508_v8  ;;  %v1344_v11 = vpop.f32.mrf.mxu1 }
 0x119   : > { %1546 = vst.msk [vmem:[%s2299_s13 + $0x18] sm:$0xff] %vm1542_vm2, %v1537_v61  ;;  %v1536_v22 = vmax.f32 %v1520_v6, %v1528_v9  ;;  %v1522_v21 = vadd.f32 %v2289_v17, %v1507_v63  ;;  %v1510_v1 = vadd.f32 %v1969_v20, %v1360_v12  ;;  %v1359_v16 = vadd.f32 %v1344_v11, %v1208_v2 }
 0x11a   : > { %v1531_v24 = vmul.f32 0.01, %v1523_v14 }
 0x11b   : > { %1545 = vst.msk [vmem:[%s2299_s13 + $0x10] sm:$0xff] %vm1542_vm2, %v1536_v22  ;;  %v1530_v26 = vmul.f32 0.01, %v1522_v21  ;;  %v1525_v36 = vadd.f32 %v2289_v17, %v1510_v1  ;;  %v1509_v13 = vadd.f32 %v1494_v23, %v1359_v16 }
 0x11c   : > { %v1539_v15 = vmax.f32 %v1523_v14, %v1531_v24 }
 0x11d   : > { %v1538_v37 = vmax.f32 %v1522_v21, %v1530_v26  ;;  %v1533_v3 = vmul.f32 0.01, %v1525_v36  ;;  %v1524_v18 = vadd.f32 %v2289_v17, %v1509_v13 }
 0x11e   : > { %1548 = vst.msk [vmem:[%s2299_s13 + $0x28] sm:$0xff] %vm1542_vm2, %v1539_v15 }
 0x11f   : > { %1547 = vst.msk [vmem:[%s2299_s13 + $0x20] sm:$0xff] %vm1542_vm2, %v1538_v37  ;;  %v1541_v25 = vmax.f32 %v1525_v36, %v1533_v3  ;;  %v1532_v28 = vmul.f32 0.01, %v1524_v18 }
 0x121   : > { %1550 = vst.msk [vmem:[%s2299_s13 + $0x38] sm:$0xff] %vm1542_vm2, %v1541_v25  ;;  %v1540_v27 = vmax.f32 %v1524_v18, %v1532_v28 }
 0x123   : > { %1549 = vst.msk [vmem:[%s2299_s13 + $0x30] sm:$0xff] %vm1542_vm2, %v1540_v27 }
 0x124 PF: > { %s13_s12 = sadd.s32 1, %s1987_s12  }
 0x125   : > { %p10_p4 = scmp.ge.s32.totalorder %s13_s12, 4  }
 0x127   :  { %12 = sbr.rel (!%p10_p4) target bundleno = 1 (0x1), region = 75 }

</bundles_post_ra>
